<compile_context>
chip_gen: v6e
topology: v6e:2x2x1
jax: 0.10.0
libtpu: 0.0.40
codegen_flags: <defaults>
</compile_context>

<pallas_src>
import functools

import jax
import jax.numpy as jnp
from jax.experimental import pallas as pl
from jax.experimental.pallas import tpu as pltpu


def _daf_kernel(fen_ref, fhae_ref, fup_ref,
                w_up_ref, b_up_ref, w_ld_ref, b_ld_ref,
                w_sa_ref, b_sa_ref, w_ca_ref, b_ca_ref,
                out_ref, *, H, W):
    f32 = jnp.float32
    HW = H * W

    fen = fen_ref[0]        # (C, HW)   channel-major, flattened spatial on the lane axis
    fhae = fhae_ref[0]      # (C, HW)
    fup = fup_ref[0]        # (2C, HW)  zero-dilated low-res decoder feature

    # --- per-tap shifts + validity masks, hoisted once and shared by all three convs
    lane = jax.lax.broadcasted_iota(jnp.int32, (1, HW), 1)
    colid = lane % W
    taps = []                                   # list of (flat shift, mask-or-None)
    for dy in range(3):
        for dx in range(3):
            s = (dy - 1) * W + (dx - 1)         # flat offset of the read position
            if dy == 1 and dx == 1:
                taps.append((0, None))          # centre tap: identity, no mask
                continue
            valid = (lane + s >= 0) & (lane + s < HW)     # vertical zero padding
            if dx == 0:                         # reading column -1 wraps -> mask col 0
                valid = valid & (colid != 0)
            elif dx == 2:                       # reading column W wraps -> mask col W-1
                valid = valid & (colid != W - 1)
            taps.append((s, valid.astype(f32)))

    def conv3x3(x, w9, b):
        # x: (Cin, HW); w9: (Cout, 9*Cin); b: (Cout, 1).  PyTorch Conv2d(k=3, pad=1).
        wins = []
        for s, mask in taps:
            if mask is None:
                wins.append(x)
            else:
                shifted = pltpu.roll(x, shift=(-s) % HW, axis=1)   # XLU lane rotate
                wins.append(shifted * mask)
        patches = jnp.concatenate(wins, axis=0)                    # (9*Cin, HW), VMEM value only
        return jnp.dot(w9, patches, preferred_element_type=f32) + b

    # ConvTranspose2d(2C->C, k3, s2, p1, op1) == plain 3x3 conv (flipped weights)
    # on the zero-dilated input.
    f_de = conv3x3(fup, w_up_ref[...], b_up_ref[...])              # (C, HW)

    f_tsi = fen + fhae + f_de                                      # (C, HW)

    # ld = relu(ld_conv(F_tsi)) * F_tsi
    ld = jnp.maximum(conv3x3(f_tsi, w_ld_ref[...], b_ld_ref[...]), 0.0) * f_tsi

    # sa = relu(sa_conv(avgpool(F_tsi))) * F_tsi.
    # A 3x3/pad-1 conv of a 1x1 map only sees its centre tap, and the spatial mean
    # commutes with that linear map, so: sa_vec = relu(mean_hw(Wc @ F_tsi) + b).
    sa_map = jnp.dot(w_sa_ref[...], f_tsi, preferred_element_type=f32)       # (C, HW)
    sa_vec = jnp.maximum(jnp.mean(sa_map, axis=1, keepdims=True) + b_sa_ref[...], 0.0)
    sa = sa_vec * f_tsi

    # ca = relu(ca_conv(mean_c(F_tsi))) * mean_c(F_tsi)
    ch_mean = jnp.mean(f_tsi, axis=0, keepdims=True)               # (1, HW)
    ca = jnp.maximum(conv3x3(ch_mean, w_ca_ref[...], b_ca_ref[...]), 0.0) * ch_mean

    w_att = jax.nn.sigmoid(ld + sa + ca)                           # EUP
    # W*F_hae + (1-W)*F_de  ==  F_de + W*(F_hae - F_de)   (one fewer VPU pass)
    out_ref[0] = f_de + w_att * (fhae - f_de)                      # lane-dense store


def daf_forward(f_en, f_hae, f_de, params):
    """DAF forward.  f_en, f_hae: (N, C, H, W); f_de: (N, 2C, H/2, W/2). NCHW f32."""
    N, C, H, W = f_en.shape
    HW = H * W

    # --- zero-dilate F_de to full resolution (stride-2 transposed conv -> plain conv).
    # Single lax.pad with interior padding: element (i, j) lands at (2i, 2j), the
    # trailing zero row/col realises output_padding=1. This is the only XLA glue.
    zero = jnp.asarray(0, f_de.dtype)
    up_in = jax.lax.pad(f_de, zero, ((0, 0, 0), (0, 0, 0), (0, 1, 1), (0, 1, 1)))
    up_in = up_in.reshape(N, 2 * C, HW)

    # --- repack weights (tiny, one-time) into (Cout, 9*Cin) matmul form; column
    #     ordering (dy, dx, ci) matches the kernel's patch stacking.
    w_up = params['w_up']   # ConvTranspose2d layout: (Cin=2C, Cout=C, kh, kw)
    w_up9 = jnp.transpose(w_up[:, :, ::-1, ::-1], (1, 2, 3, 0)).reshape(C, 9 * 2 * C)
    w_ld9 = jnp.transpose(params['w_ld'], (0, 2, 3, 1)).reshape(C, 9 * C)
    w_sac = params['w_sa'][:, :, 1, 1]                       # centre tap only, (C, C)
    w_ca9 = jnp.transpose(params['w_ca'], (0, 2, 3, 1)).reshape(C, 9)

    def cvec(b):                                             # (C,) -> (C, 1)
        return b.reshape(C, 1)

    sample_spec = lambda c: pl.BlockSpec((1, c, HW), lambda n: (n, 0, 0))
    full_spec = lambda shape: pl.BlockSpec(shape, lambda n: (0,) * len(shape))

    kernel = functools.partial(_daf_kernel, H=H, W=W)
    out = pl.pallas_call(
        kernel,
        out_shape=jax.ShapeDtypeStruct((N, C, HW), jnp.float32),
        grid=(N,),
        in_specs=[
            sample_spec(C),            # F_en
            sample_spec(C),            # F_hae
            sample_spec(2 * C),        # zero-dilated F_de
            full_spec((C, 9 * 2 * C)), full_spec((C, 1)),    # up_conv (flipped) + bias
            full_spec((C, 9 * C)),     full_spec((C, 1)),    # ld_conv + bias
            full_spec((C, C)),         full_spec((C, 1)),    # sa_conv centre tap + bias
            full_spec((C, 9)),         full_spec((C, 1)),    # ca_conv + bias
        ],
        out_specs=sample_spec(C),
        compiler_params=pltpu.CompilerParams(
            dimension_semantics=("parallel",)),   # multi-TC chips split the batch
    )(f_en.reshape(N, C, HW), f_hae.reshape(N, C, HW), up_in,
      w_up9, cvec(params['b_up']), w_ld9, cvec(params['b_ld']),
      w_sac, cvec(params['b_sa']), w_ca9, cvec(params['b_ca']))
    return out.reshape(N, C, H, W)


# ----------------------------- pure-JAX reference ----------------------------
def _ref_conv3x3(x, w, b):
    # PyTorch Conv2d(k=3, padding=1) semantics; exact f32 (no MXU), any H, W.
    N, Cin, H, W = x.shape
    Cout = w.shape[0]
    xp = jnp.pad(x, ((0, 0), (0, 0), (1, 1), (1, 1)))
    out = jnp.zeros((N, Cout, H, W), jnp.float32) + b[None, :, None, None]
    for dy in range(3):
        for dx in range(3):
            win = xp[:, :, dy:dy + H, dx:dx + W]                  # (N, Cin, H, W)
            wk = w[:, :, dy, dx]                                  # (Cout, Cin)
            out = out + jnp.sum(win[:, None] * wk[None, :, :, None, None], axis=2)
    return out


def _ref_conv_transpose(x, w, b):
    # PyTorch ConvTranspose2d(k=3, s=2, p=1, output_padding=1), from the definition.
    N, Cin, Hs, Ws = x.shape
    Cout = w.shape[1]
    H, W = 2 * Hs, 2 * Ws
    acc = jnp.zeros((N, Cout, H + 2, W + 2), jnp.float32)
    for kh in range(3):
        for kw in range(3):
            wk = w[:, :, kh, kw]                                  # (Cin, Cout)
            contrib = jnp.sum(x[:, :, None, :, :] * wk[None, :, :, None, None], axis=1)
            acc = acc.at[:, :, kh:kh + 2 * Hs:2, kw:kw + 2 * Ws:2].add(contrib)
    return acc[:, :, 1:1 + H, 1:1 + W] + b[None, :, None, None]


def _ref_daf(f_en, f_hae, f_de, p):
    f_de_up = _ref_conv_transpose(f_de, p['w_up'], p['b_up'])
    f_tsi = f_en + f_hae + f_de_up
    ld = jax.nn.relu(_ref_conv3x3(f_tsi, p['w_ld'], p['b_ld'])) * f_tsi
    pooled = jnp.mean(f_tsi, axis=(2, 3), keepdims=True)
    sa = jax.nn.relu(_ref_conv3x3(pooled, p['w_sa'], p['b_sa'])) * f_tsi
    ch_mean = jnp.mean(f_tsi, axis=1, keepdims=True)
    ca = jax.nn.relu(_ref_conv3x3(ch_mean, p['w_ca'], p['b_ca'])) * ch_mean
    w_att = jax.nn.sigmoid(ld + sa + ca)
    return w_att * f_hae + (1.0 - w_att) * f_de_up


if __name__ == "__main__":
    key = jax.random.PRNGKey(0)
    k = jax.random.split(key, 11)
    N, C, H, W = 2, 4, 16, 16

    f_en = jax.random.normal(k[0], (N, C, H, W), jnp.float32)
    f_hae = jax.random.normal(k[1], (N, C, H, W), jnp.float32)
    f_de = jax.random.normal(k[2], (N, 2 * C, H // 2, W // 2), jnp.float32)
    params = {
        'w_up': 0.1 * jax.random.normal(k[3], (2 * C, C, 3, 3), jnp.float32),
        'b_up': 0.1 * jax.random.normal(k[4], (C,), jnp.float32),
        'w_ld': 0.1 * jax.random.normal(k[5], (C, C, 3, 3), jnp.float32),
        'b_ld': 0.1 * jax.random.normal(k[6], (C,), jnp.float32),
        'w_sa': 0.1 * jax.random.normal(k[7], (C, C, 3, 3), jnp.float32),
        'b_sa': 0.1 * jax.random.normal(k[8], (C,), jnp.float32),
        'w_ca': 0.1 * jax.random.normal(k[9], (C, 1, 3, 3), jnp.float32),
        'b_ca': 0.1 * jax.random.normal(k[10], (C,), jnp.float32),
    }

    out = jax.jit(daf_forward)(f_en, f_hae, f_de, params)
    jax.block_until_ready(out)
    assert out.shape == (N, C, H, W), out.shape

    ref = jax.jit(_ref_daf)(f_en, f_hae, f_de, params)
    err = float(jnp.max(jnp.abs(out - ref)))
    assert err < 3e-2, f"max abs error vs reference: {err}"
    print("KERNEL_OK")
</pallas_src>

<mosaic_0001>
module attributes {stable_mosaic.version = 11 : i64} {
  func.func @_daf_kernel(%arg0: i32, %arg1: memref<1x4x256xf32, #tpu.memory_space<vmem>>, %arg2: memref<1x4x256xf32, #tpu.memory_space<vmem>>, %arg3: memref<1x8x256xf32, #tpu.memory_space<vmem>>, %arg4: memref<4x72xf32, #tpu.memory_space<vmem>>, %arg5: memref<4x1xf32, #tpu.memory_space<vmem>>, %arg6: memref<4x36xf32, #tpu.memory_space<vmem>>, %arg7: memref<4x1xf32, #tpu.memory_space<vmem>>, %arg8: memref<4x4xf32, #tpu.memory_space<vmem>>, %arg9: memref<4x1xf32, #tpu.memory_space<vmem>>, %arg10: memref<4x9xf32, #tpu.memory_space<vmem>>, %arg11: memref<4x1xf32, #tpu.memory_space<vmem>>, %arg12: memref<1x4x256xf32, #tpu.memory_space<vmem>>) attributes {dimension_semantics = [#tpu.dimension_semantics<parallel>], iteration_bounds = array<i64: 2>, scalar_prefetch = 0 : i64, scratch_operands = 0 : i64, tpu.core_type = #tpu.core_type<tc>, window_params = [{transform_indices = @transform_0, window_bounds = array<i64: 1, 4, 256>}, {transform_indices = @transform_1, window_bounds = array<i64: 1, 4, 256>}, {transform_indices = @transform_2, window_bounds = array<i64: 1, 8, 256>}, {pipeline_mode = #tpu.pipeline_mode<synchronous>, transform_indices = @transform_3, window_bounds = array<i64: 4, 72>}, {pipeline_mode = #tpu.pipeline_mode<synchronous>, transform_indices = @transform_4, window_bounds = array<i64: 4, 1>}, {pipeline_mode = #tpu.pipeline_mode<synchronous>, transform_indices = @transform_5, window_bounds = array<i64: 4, 36>}, {pipeline_mode = #tpu.pipeline_mode<synchronous>, transform_indices = @transform_6, window_bounds = array<i64: 4, 1>}, {pipeline_mode = #tpu.pipeline_mode<synchronous>, transform_indices = @transform_7, window_bounds = array<i64: 4, 4>}, {pipeline_mode = #tpu.pipeline_mode<synchronous>, transform_indices = @transform_8, window_bounds = array<i64: 4, 1>}, {pipeline_mode = #tpu.pipeline_mode<synchronous>, transform_indices = @transform_9, window_bounds = array<i64: 4, 9>}, {pipeline_mode = #tpu.pipeline_mode<synchronous>, transform_indices = @transform_10, window_bounds = array<i64: 4, 1>}, {transform_indices = @transform_11, window_bounds = array<i64: 1, 4, 256>}]} {
    %c0 = arith.constant 0 : index
    %c0_0 = arith.constant 0 : index
    %c0_1 = arith.constant 0 : index
    %0 = vector.load %arg1[%c0, %c0_0, %c0_1] : memref<1x4x256xf32, #tpu.memory_space<vmem>>, vector<1x4x256xf32>
    %1 = vector.shape_cast %0 : vector<1x4x256xf32> to vector<4x256xf32>
    %c0_2 = arith.constant 0 : index
    %c0_3 = arith.constant 0 : index
    %c0_4 = arith.constant 0 : index
    %2 = vector.load %arg2[%c0_2, %c0_3, %c0_4] : memref<1x4x256xf32, #tpu.memory_space<vmem>>, vector<1x4x256xf32>
    %3 = vector.shape_cast %2 : vector<1x4x256xf32> to vector<4x256xf32>
    %c0_5 = arith.constant 0 : index
    %c0_6 = arith.constant 0 : index
    %c0_7 = arith.constant 0 : index
    %4 = vector.load %arg3[%c0_5, %c0_6, %c0_7] : memref<1x8x256xf32, #tpu.memory_space<vmem>>, vector<1x8x256xf32>
    %5 = vector.shape_cast %4 : vector<1x8x256xf32> to vector<8x256xf32>
    %6 = tpu.iota {dimensions = array<i32: 1>} : vector<1x256xi32>
    %c16_i32 = arith.constant 16 : i32
    %c0_i32 = arith.constant 0 : i32
    %7 = arith.cmpi eq, %c16_i32, %c0_i32 : i32
    %c1_i32 = arith.constant 1 : i32
    %8 = arith.select %7, %c1_i32, %c16_i32 : i32
    %9 = vector.broadcast %8 : i32 to vector<1x256xi32>
    %10 = arith.remsi %6, %9 : vector<1x256xi32>
    %c0_i32_8 = arith.constant 0 : i32
    %11 = vector.broadcast %c0_i32_8 : i32 to vector<1x256xi32>
    %12 = arith.cmpi ne, %10, %11 : vector<1x256xi32>
    %c0_i32_9 = arith.constant 0 : i32
    %13 = vector.broadcast %c0_i32_9 : i32 to vector<1x256xi32>
    %14 = arith.cmpi slt, %10, %13 : vector<1x256xi32>
    %c0_i32_10 = arith.constant 0 : i32
    %15 = arith.cmpi slt, %8, %c0_i32_10 : i32
    %16 = vector.broadcast %15 : i1 to vector<1x256xi1>
    %17 = vector.broadcast %16 : vector<1x256xi1> to vector<1x256xi1>
    %18 = arith.xori %14, %17 : vector<1x256xi1>
    %19 = arith.andi %18, %12 : vector<1x256xi1>
    %20 = vector.broadcast %8 : i32 to vector<1x256xi32>
    %21 = arith.addi %10, %20 : vector<1x256xi32>
    %22 = arith.select %19, %21, %10 : vector<1x256xi1>, vector<1x256xi32>
    %c-17_i32 = arith.constant -17 : i32
    %23 = vector.broadcast %c-17_i32 : i32 to vector<1x256xi32>
    %24 = arith.addi %6, %23 : vector<1x256xi32>
    %c0_i32_11 = arith.constant 0 : i32
    %25 = vector.broadcast %c0_i32_11 : i32 to vector<1x256xi32>
    %26 = arith.cmpi sge, %24, %25 : vector<1x256xi32>
    %c-17_i32_12 = arith.constant -17 : i32
    %27 = vector.broadcast %c-17_i32_12 : i32 to vector<1x256xi32>
    %28 = arith.addi %6, %27 : vector<1x256xi32>
    %c256_i32 = arith.constant 256 : i32
    %29 = vector.broadcast %c256_i32 : i32 to vector<1x256xi32>
    %30 = arith.cmpi slt, %28, %29 : vector<1x256xi32>
    %31 = arith.andi %26, %30 : vector<1x256xi1>
    %c0_i32_13 = arith.constant 0 : i32
    %32 = vector.broadcast %c0_i32_13 : i32 to vector<1x256xi32>
    %33 = arith.cmpi ne, %22, %32 : vector<1x256xi32>
    %34 = arith.andi %31, %33 : vector<1x256xi1>
    %35 = arith.extui %34 : vector<1x256xi1> to vector<1x256xi32>
    %36 = arith.sitofp %35 : vector<1x256xi32> to vector<1x256xf32>
    %c-16_i32 = arith.constant -16 : i32
    %37 = vector.broadcast %c-16_i32 : i32 to vector<1x256xi32>
    %38 = arith.addi %6, %37 : vector<1x256xi32>
    %c0_i32_14 = arith.constant 0 : i32
    %39 = vector.broadcast %c0_i32_14 : i32 to vector<1x256xi32>
    %40 = arith.cmpi sge, %38, %39 : vector<1x256xi32>
    %c-16_i32_15 = arith.constant -16 : i32
    %41 = vector.broadcast %c-16_i32_15 : i32 to vector<1x256xi32>
    %42 = arith.addi %6, %41 : vector<1x256xi32>
    %c256_i32_16 = arith.constant 256 : i32
    %43 = vector.broadcast %c256_i32_16 : i32 to vector<1x256xi32>
    %44 = arith.cmpi slt, %42, %43 : vector<1x256xi32>
    %45 = arith.andi %40, %44 : vector<1x256xi1>
    %46 = arith.extui %45 : vector<1x256xi1> to vector<1x256xi32>
    %47 = arith.sitofp %46 : vector<1x256xi32> to vector<1x256xf32>
    %c-15_i32 = arith.constant -15 : i32
    %48 = vector.broadcast %c-15_i32 : i32 to vector<1x256xi32>
    %49 = arith.addi %6, %48 : vector<1x256xi32>
    %c0_i32_17 = arith.constant 0 : i32
    %50 = vector.broadcast %c0_i32_17 : i32 to vector<1x256xi32>
    %51 = arith.cmpi sge, %49, %50 : vector<1x256xi32>
    %c-15_i32_18 = arith.constant -15 : i32
    %52 = vector.broadcast %c-15_i32_18 : i32 to vector<1x256xi32>
    %53 = arith.addi %6, %52 : vector<1x256xi32>
    %c256_i32_19 = arith.constant 256 : i32
    %54 = vector.broadcast %c256_i32_19 : i32 to vector<1x256xi32>
    %55 = arith.cmpi slt, %53, %54 : vector<1x256xi32>
    %56 = arith.andi %51, %55 : vector<1x256xi1>
    %c15_i32 = arith.constant 15 : i32
    %57 = vector.broadcast %c15_i32 : i32 to vector<1x256xi32>
    %58 = arith.cmpi ne, %22, %57 : vector<1x256xi32>
    %59 = arith.andi %56, %58 : vector<1x256xi1>
    %60 = arith.extui %59 : vector<1x256xi1> to vector<1x256xi32>
    %61 = arith.sitofp %60 : vector<1x256xi32> to vector<1x256xf32>
    %c-1_i32 = arith.constant -1 : i32
    %62 = vector.broadcast %c-1_i32 : i32 to vector<1x256xi32>
    %63 = arith.addi %6, %62 : vector<1x256xi32>
    %c0_i32_20 = arith.constant 0 : i32
    %64 = vector.broadcast %c0_i32_20 : i32 to vector<1x256xi32>
    %65 = arith.cmpi sge, %63, %64 : vector<1x256xi32>
    %c-1_i32_21 = arith.constant -1 : i32
    %66 = vector.broadcast %c-1_i32_21 : i32 to vector<1x256xi32>
    %67 = arith.addi %6, %66 : vector<1x256xi32>
    %c256_i32_22 = arith.constant 256 : i32
    %68 = vector.broadcast %c256_i32_22 : i32 to vector<1x256xi32>
    %69 = arith.cmpi slt, %67, %68 : vector<1x256xi32>
    %70 = arith.andi %65, %69 : vector<1x256xi1>
    %c0_i32_23 = arith.constant 0 : i32
    %71 = vector.broadcast %c0_i32_23 : i32 to vector<1x256xi32>
    %72 = arith.cmpi ne, %22, %71 : vector<1x256xi32>
    %73 = arith.andi %70, %72 : vector<1x256xi1>
    %74 = arith.extui %73 : vector<1x256xi1> to vector<1x256xi32>
    %75 = arith.sitofp %74 : vector<1x256xi32> to vector<1x256xf32>
    %c1_i32_24 = arith.constant 1 : i32
    %76 = vector.broadcast %c1_i32_24 : i32 to vector<1x256xi32>
    %77 = arith.addi %6, %76 : vector<1x256xi32>
    %c0_i32_25 = arith.constant 0 : i32
    %78 = vector.broadcast %c0_i32_25 : i32 to vector<1x256xi32>
    %79 = arith.cmpi sge, %77, %78 : vector<1x256xi32>
    %c1_i32_26 = arith.constant 1 : i32
    %80 = vector.broadcast %c1_i32_26 : i32 to vector<1x256xi32>
    %81 = arith.addi %6, %80 : vector<1x256xi32>
    %c256_i32_27 = arith.constant 256 : i32
    %82 = vector.broadcast %c256_i32_27 : i32 to vector<1x256xi32>
    %83 = arith.cmpi slt, %81, %82 : vector<1x256xi32>
    %84 = arith.andi %79, %83 : vector<1x256xi1>
    %c15_i32_28 = arith.constant 15 : i32
    %85 = vector.broadcast %c15_i32_28 : i32 to vector<1x256xi32>
    %86 = arith.cmpi ne, %22, %85 : vector<1x256xi32>
    %87 = arith.andi %84, %86 : vector<1x256xi1>
    %88 = arith.extui %87 : vector<1x256xi1> to vector<1x256xi32>
    %89 = arith.sitofp %88 : vector<1x256xi32> to vector<1x256xf32>
    %c15_i32_29 = arith.constant 15 : i32
    %90 = vector.broadcast %c15_i32_29 : i32 to vector<1x256xi32>
    %91 = arith.addi %6, %90 : vector<1x256xi32>
    %c0_i32_30 = arith.constant 0 : i32
    %92 = vector.broadcast %c0_i32_30 : i32 to vector<1x256xi32>
    %93 = arith.cmpi sge, %91, %92 : vector<1x256xi32>
    %c15_i32_31 = arith.constant 15 : i32
    %94 = vector.broadcast %c15_i32_31 : i32 to vector<1x256xi32>
    %95 = arith.addi %6, %94 : vector<1x256xi32>
    %c256_i32_32 = arith.constant 256 : i32
    %96 = vector.broadcast %c256_i32_32 : i32 to vector<1x256xi32>
    %97 = arith.cmpi slt, %95, %96 : vector<1x256xi32>
    %98 = arith.andi %93, %97 : vector<1x256xi1>
    %c0_i32_33 = arith.constant 0 : i32
    %99 = vector.broadcast %c0_i32_33 : i32 to vector<1x256xi32>
    %100 = arith.cmpi ne, %22, %99 : vector<1x256xi32>
    %101 = arith.andi %98, %100 : vector<1x256xi1>
    %102 = arith.extui %101 : vector<1x256xi1> to vector<1x256xi32>
    %103 = arith.sitofp %102 : vector<1x256xi32> to vector<1x256xf32>
    %c16_i32_34 = arith.constant 16 : i32
    %104 = vector.broadcast %c16_i32_34 : i32 to vector<1x256xi32>
    %105 = arith.addi %6, %104 : vector<1x256xi32>
    %c0_i32_35 = arith.constant 0 : i32
    %106 = vector.broadcast %c0_i32_35 : i32 to vector<1x256xi32>
    %107 = arith.cmpi sge, %105, %106 : vector<1x256xi32>
    %c16_i32_36 = arith.constant 16 : i32
    %108 = vector.broadcast %c16_i32_36 : i32 to vector<1x256xi32>
    %109 = arith.addi %6, %108 : vector<1x256xi32>
    %c256_i32_37 = arith.constant 256 : i32
    %110 = vector.broadcast %c256_i32_37 : i32 to vector<1x256xi32>
    %111 = arith.cmpi slt, %109, %110 : vector<1x256xi32>
    %112 = arith.andi %107, %111 : vector<1x256xi1>
    %113 = arith.extui %112 : vector<1x256xi1> to vector<1x256xi32>
    %114 = arith.sitofp %113 : vector<1x256xi32> to vector<1x256xf32>
    %c17_i32 = arith.constant 17 : i32
    %115 = vector.broadcast %c17_i32 : i32 to vector<1x256xi32>
    %116 = arith.addi %6, %115 : vector<1x256xi32>
    %c0_i32_38 = arith.constant 0 : i32
    %117 = vector.broadcast %c0_i32_38 : i32 to vector<1x256xi32>
    %118 = arith.cmpi sge, %116, %117 : vector<1x256xi32>
    %c17_i32_39 = arith.constant 17 : i32
    %119 = vector.broadcast %c17_i32_39 : i32 to vector<1x256xi32>
    %120 = arith.addi %6, %119 : vector<1x256xi32>
    %c256_i32_40 = arith.constant 256 : i32
    %121 = vector.broadcast %c256_i32_40 : i32 to vector<1x256xi32>
    %122 = arith.cmpi slt, %120, %121 : vector<1x256xi32>
    %123 = arith.andi %118, %122 : vector<1x256xi1>
    %c15_i32_41 = arith.constant 15 : i32
    %124 = vector.broadcast %c15_i32_41 : i32 to vector<1x256xi32>
    %125 = arith.cmpi ne, %22, %124 : vector<1x256xi32>
    %126 = arith.andi %123, %125 : vector<1x256xi1>
    %127 = arith.extui %126 : vector<1x256xi1> to vector<1x256xi32>
    %128 = arith.sitofp %127 : vector<1x256xi32> to vector<1x256xf32>
    %c0_42 = arith.constant 0 : index
    %c0_43 = arith.constant 0 : index
    %129 = vector.load %arg4[%c0_42, %c0_43] : memref<4x72xf32, #tpu.memory_space<vmem>>, vector<4x72xf32>
    %c0_44 = arith.constant 0 : index
    %c0_45 = arith.constant 0 : index
    %130 = vector.load %arg5[%c0_44, %c0_45] : memref<4x1xf32, #tpu.memory_space<vmem>>, vector<4x1xf32>
    %c17_i32_46 = arith.constant 17 : i32
    %131 = tpu.dynamic_rotate %5 by %c17_i32_46 dim 1 : vector<8x256xf32>, i32 -> vector<8x256xf32>
    %132 = vector.broadcast %36 : vector<1x256xf32> to vector<8x256xf32>
    %133 = arith.mulf %131, %132 : vector<8x256xf32>
    %c16_i32_47 = arith.constant 16 : i32
    %134 = tpu.dynamic_rotate %5 by %c16_i32_47 dim 1 : vector<8x256xf32>, i32 -> vector<8x256xf32>
    %135 = vector.broadcast %47 : vector<1x256xf32> to vector<8x256xf32>
    %136 = arith.mulf %134, %135 : vector<8x256xf32>
    %c15_i32_48 = arith.constant 15 : i32
    %137 = tpu.dynamic_rotate %5 by %c15_i32_48 dim 1 : vector<8x256xf32>, i32 -> vector<8x256xf32>
    %138 = vector.broadcast %61 : vector<1x256xf32> to vector<8x256xf32>
    %139 = arith.mulf %137, %138 : vector<8x256xf32>
    %c1_i32_49 = arith.constant 1 : i32
    %140 = tpu.dynamic_rotate %5 by %c1_i32_49 dim 1 : vector<8x256xf32>, i32 -> vector<8x256xf32>
    %141 = vector.broadcast %75 : vector<1x256xf32> to vector<8x256xf32>
    %142 = arith.mulf %140, %141 : vector<8x256xf32>
    %c255_i32 = arith.constant 255 : i32
    %143 = tpu.dynamic_rotate %5 by %c255_i32 dim 1 : vector<8x256xf32>, i32 -> vector<8x256xf32>
    %144 = vector.broadcast %89 : vector<1x256xf32> to vector<8x256xf32>
    %145 = arith.mulf %143, %144 : vector<8x256xf32>
    %c241_i32 = arith.constant 241 : i32
    %146 = tpu.dynamic_rotate %5 by %c241_i32 dim 1 : vector<8x256xf32>, i32 -> vector<8x256xf32>
    %147 = vector.broadcast %103 : vector<1x256xf32> to vector<8x256xf32>
    %148 = arith.mulf %146, %147 : vector<8x256xf32>
    %c240_i32 = arith.constant 240 : i32
    %149 = tpu.dynamic_rotate %5 by %c240_i32 dim 1 : vector<8x256xf32>, i32 -> vector<8x256xf32>
    %150 = vector.broadcast %114 : vector<1x256xf32> to vector<8x256xf32>
    %151 = arith.mulf %149, %150 : vector<8x256xf32>
    %c239_i32 = arith.constant 239 : i32
    %152 = tpu.dynamic_rotate %5 by %c239_i32 dim 1 : vector<8x256xf32>, i32 -> vector<8x256xf32>
    %153 = vector.broadcast %128 : vector<1x256xf32> to vector<8x256xf32>
    %154 = arith.mulf %152, %153 : vector<8x256xf32>
    %155 = tpu.concatenate %133, %136, %139, %142, %5, %145, %148, %151, %154 in 0 : vector<8x256xf32>, vector<8x256xf32>, vector<8x256xf32>, vector<8x256xf32>, vector<8x256xf32>, vector<8x256xf32>, vector<8x256xf32>, vector<8x256xf32>, vector<8x256xf32> -> vector<72x256xf32>
    %cst = arith.constant dense<0.000000e+00> : vector<4x256xf32>
    %156 = tpu.matmul %129, %155, %cst {dimension_numbers = #tpu.dot_dimension_numbers<[1], [0], [0], [1], [0, 0, 1, 1], [], []>} : vector<4x72xf32>, vector<72x256xf32>, vector<4x256xf32> -> vector<4x256xf32>
    %157 = vector.broadcast %130 : vector<4x1xf32> to vector<4x256xf32>
    %158 = arith.addf %156, %157 : vector<4x256xf32>
    %159 = arith.addf %1, %3 : vector<4x256xf32>
    %160 = arith.addf %159, %158 : vector<4x256xf32>
    %c0_50 = arith.constant 0 : index
    %c0_51 = arith.constant 0 : index
    %161 = vector.load %arg6[%c0_50, %c0_51] : memref<4x36xf32, #tpu.memory_space<vmem>>, vector<4x36xf32>
    %c0_52 = arith.constant 0 : index
    %c0_53 = arith.constant 0 : index
    %162 = vector.load %arg7[%c0_52, %c0_53] : memref<4x1xf32, #tpu.memory_space<vmem>>, vector<4x1xf32>
    %c17_i32_54 = arith.constant 17 : i32
    %163 = tpu.dynamic_rotate %160 by %c17_i32_54 dim 1 : vector<4x256xf32>, i32 -> vector<4x256xf32>
    %164 = vector.broadcast %36 : vector<1x256xf32> to vector<4x256xf32>
    %165 = arith.mulf %163, %164 : vector<4x256xf32>
    %c16_i32_55 = arith.constant 16 : i32
    %166 = tpu.dynamic_rotate %160 by %c16_i32_55 dim 1 : vector<4x256xf32>, i32 -> vector<4x256xf32>
    %167 = vector.broadcast %47 : vector<1x256xf32> to vector<4x256xf32>
    %168 = arith.mulf %166, %167 : vector<4x256xf32>
    %c15_i32_56 = arith.constant 15 : i32
    %169 = tpu.dynamic_rotate %160 by %c15_i32_56 dim 1 : vector<4x256xf32>, i32 -> vector<4x256xf32>
    %170 = vector.broadcast %61 : vector<1x256xf32> to vector<4x256xf32>
    %171 = arith.mulf %169, %170 : vector<4x256xf32>
    %c1_i32_57 = arith.constant 1 : i32
    %172 = tpu.dynamic_rotate %160 by %c1_i32_57 dim 1 : vector<4x256xf32>, i32 -> vector<4x256xf32>
    %173 = vector.broadcast %75 : vector<1x256xf32> to vector<4x256xf32>
    %174 = arith.mulf %172, %173 : vector<4x256xf32>
    %c255_i32_58 = arith.constant 255 : i32
    %175 = tpu.dynamic_rotate %160 by %c255_i32_58 dim 1 : vector<4x256xf32>, i32 -> vector<4x256xf32>
    %176 = vector.broadcast %89 : vector<1x256xf32> to vector<4x256xf32>
    %177 = arith.mulf %175, %176 : vector<4x256xf32>
    %c241_i32_59 = arith.constant 241 : i32
    %178 = tpu.dynamic_rotate %160 by %c241_i32_59 dim 1 : vector<4x256xf32>, i32 -> vector<4x256xf32>
    %179 = vector.broadcast %103 : vector<1x256xf32> to vector<4x256xf32>
    %180 = arith.mulf %178, %179 : vector<4x256xf32>
    %c240_i32_60 = arith.constant 240 : i32
    %181 = tpu.dynamic_rotate %160 by %c240_i32_60 dim 1 : vector<4x256xf32>, i32 -> vector<4x256xf32>
    %182 = vector.broadcast %114 : vector<1x256xf32> to vector<4x256xf32>
    %183 = arith.mulf %181, %182 : vector<4x256xf32>
    %c239_i32_61 = arith.constant 239 : i32
    %184 = tpu.dynamic_rotate %160 by %c239_i32_61 dim 1 : vector<4x256xf32>, i32 -> vector<4x256xf32>
    %185 = vector.broadcast %128 : vector<1x256xf32> to vector<4x256xf32>
    %186 = arith.mulf %184, %185 : vector<4x256xf32>
    %187 = tpu.concatenate %165, %168, %171, %174, %160, %177, %180, %183, %186 in 0 : vector<4x256xf32>, vector<4x256xf32>, vector<4x256xf32>, vector<4x256xf32>, vector<4x256xf32>, vector<4x256xf32>, vector<4x256xf32>, vector<4x256xf32>, vector<4x256xf32> -> vector<36x256xf32>
    %cst_62 = arith.constant dense<0.000000e+00> : vector<4x256xf32>
    %188 = tpu.matmul %161, %187, %cst_62 {dimension_numbers = #tpu.dot_dimension_numbers<[1], [0], [0], [1], [0, 0, 1, 1], [], []>} : vector<4x36xf32>, vector<36x256xf32>, vector<4x256xf32> -> vector<4x256xf32>
    %189 = vector.broadcast %162 : vector<4x1xf32> to vector<4x256xf32>
    %190 = arith.addf %188, %189 : vector<4x256xf32>
    %cst_63 = arith.constant 0.000000e+00 : f32
    %191 = vector.broadcast %cst_63 : f32 to vector<4x256xf32>
    %192 = arith.maximumf %190, %191 : vector<4x256xf32>
    %193 = arith.mulf %192, %160 : vector<4x256xf32>
    %c0_64 = arith.constant 0 : index
    %c0_65 = arith.constant 0 : index
    %194 = vector.load %arg8[%c0_64, %c0_65] : memref<4x4xf32, #tpu.memory_space<vmem>>, vector<4x4xf32>
    %cst_66 = arith.constant dense<0.000000e+00> : vector<4x256xf32>
    %195 = tpu.matmul %194, %160, %cst_66 {dimension_numbers = #tpu.dot_dimension_numbers<[1], [0], [0], [1], [0, 0, 1, 1], [], []>} : vector<4x4xf32>, vector<4x256xf32>, vector<4x256xf32> -> vector<4x256xf32>
    %cst_67 = arith.constant dense<0.000000e+00> : vector<4xf32>
    %196 = vector.multi_reduction <add>, %195, %cst_67 [1] : vector<4x256xf32> to vector<4xf32>
    %197 = vector.shape_cast %196 : vector<4xf32> to vector<4x1xf32>
    %cst_68 = arith.constant 2.560000e+02 : f32
    %198 = vector.broadcast %cst_68 : f32 to vector<4x1xf32>
    %199 = arith.divf %197, %198 : vector<4x1xf32>
    %c0_69 = arith.constant 0 : index
    %c0_70 = arith.constant 0 : index
    %200 = vector.load %arg9[%c0_69, %c0_70] : memref<4x1xf32, #tpu.memory_space<vmem>>, vector<4x1xf32>
    %201 = arith.addf %199, %200 : vector<4x1xf32>
    %cst_71 = arith.constant 0.000000e+00 : f32
    %202 = vector.broadcast %cst_71 : f32 to vector<4x1xf32>
    %203 = arith.maximumf %201, %202 : vector<4x1xf32>
    %204 = vector.broadcast %203 : vector<4x1xf32> to vector<4x256xf32>
    %205 = arith.mulf %204, %160 : vector<4x256xf32>
    %cst_72 = arith.constant dense<0.000000e+00> : vector<256xf32>
    %206 = vector.multi_reduction <add>, %160, %cst_72 [0] : vector<4x256xf32> to vector<256xf32>
    %207 = vector.shape_cast %206 : vector<256xf32> to vector<1x256xf32>
    %cst_73 = arith.constant 4.000000e+00 : f32
    %208 = vector.broadcast %cst_73 : f32 to vector<1x256xf32>
    %209 = arith.divf %207, %208 : vector<1x256xf32>
    %c0_74 = arith.constant 0 : index
    %c0_75 = arith.constant 0 : index
    %210 = vector.load %arg10[%c0_74, %c0_75] : memref<4x9xf32, #tpu.memory_space<vmem>>, vector<4x9xf32>
    %c0_76 = arith.constant 0 : index
    %c0_77 = arith.constant 0 : index
    %211 = vector.load %arg11[%c0_76, %c0_77] : memref<4x1xf32, #tpu.memory_space<vmem>>, vector<4x1xf32>
    %c17_i32_78 = arith.constant 17 : i32
    %212 = tpu.dynamic_rotate %209 by %c17_i32_78 dim 1 : vector<1x256xf32>, i32 -> vector<1x256xf32>
    %213 = arith.mulf %212, %36 : vector<1x256xf32>
    %c16_i32_79 = arith.constant 16 : i32
    %214 = tpu.dynamic_rotate %209 by %c16_i32_79 dim 1 : vector<1x256xf32>, i32 -> vector<1x256xf32>
    %215 = arith.mulf %214, %47 : vector<1x256xf32>
    %c15_i32_80 = arith.constant 15 : i32
    %216 = tpu.dynamic_rotate %209 by %c15_i32_80 dim 1 : vector<1x256xf32>, i32 -> vector<1x256xf32>
    %217 = arith.mulf %216, %61 : vector<1x256xf32>
    %c1_i32_81 = arith.constant 1 : i32
    %218 = tpu.dynamic_rotate %209 by %c1_i32_81 dim 1 : vector<1x256xf32>, i32 -> vector<1x256xf32>
    %219 = arith.mulf %218, %75 : vector<1x256xf32>
    %c255_i32_82 = arith.constant 255 : i32
    %220 = tpu.dynamic_rotate %209 by %c255_i32_82 dim 1 : vector<1x256xf32>, i32 -> vector<1x256xf32>
    %221 = arith.mulf %220, %89 : vector<1x256xf32>
    %c241_i32_83 = arith.constant 241 : i32
    %222 = tpu.dynamic_rotate %209 by %c241_i32_83 dim 1 : vector<1x256xf32>, i32 -> vector<1x256xf32>
    %223 = arith.mulf %222, %103 : vector<1x256xf32>
    %c240_i32_84 = arith.constant 240 : i32
    %224 = tpu.dynamic_rotate %209 by %c240_i32_84 dim 1 : vector<1x256xf32>, i32 -> vector<1x256xf32>
    %225 = arith.mulf %224, %114 : vector<1x256xf32>
    %c239_i32_85 = arith.constant 239 : i32
    %226 = tpu.dynamic_rotate %209 by %c239_i32_85 dim 1 : vector<1x256xf32>, i32 -> vector<1x256xf32>
    %227 = arith.mulf %226, %128 : vector<1x256xf32>
    %228 = tpu.concatenate %213, %215, %217, %219, %209, %221, %223, %225, %227 in 0 : vector<1x256xf32>, vector<1x256xf32>, vector<1x256xf32>, vector<1x256xf32>, vector<1x256xf32>, vector<1x256xf32>, vector<1x256xf32>, vector<1x256xf32>, vector<1x256xf32> -> vector<9x256xf32>
    %cst_86 = arith.constant dense<0.000000e+00> : vector<4x256xf32>
    %229 = tpu.matmul %210, %228, %cst_86 {dimension_numbers = #tpu.dot_dimension_numbers<[1], [0], [0], [1], [0, 0, 1, 1], [], []>} : vector<4x9xf32>, vector<9x256xf32>, vector<4x256xf32> -> vector<4x256xf32>
    %230 = vector.broadcast %211 : vector<4x1xf32> to vector<4x256xf32>
    %231 = arith.addf %229, %230 : vector<4x256xf32>
    %cst_87 = arith.constant 0.000000e+00 : f32
    %232 = vector.broadcast %cst_87 : f32 to vector<4x256xf32>
    %233 = arith.maximumf %231, %232 : vector<4x256xf32>
    %234 = vector.broadcast %209 : vector<1x256xf32> to vector<4x256xf32>
    %235 = arith.mulf %233, %234 : vector<4x256xf32>
    %236 = arith.addf %193, %205 : vector<4x256xf32>
    %237 = arith.addf %236, %235 : vector<4x256xf32>
    %238 = arith.negf %237 : vector<4x256xf32>
    %239 = math.exp %238 : vector<4x256xf32>
    %cst_88 = arith.constant 1.000000e+00 : f32
    %240 = vector.broadcast %cst_88 : f32 to vector<4x256xf32>
    %241 = arith.addf %240, %239 : vector<4x256xf32>
    %242 = arith.divf %240, %241 : vector<4x256xf32>
    %243 = arith.subf %3, %158 : vector<4x256xf32>
    %244 = arith.mulf %242, %243 : vector<4x256xf32>
    %245 = arith.addf %158, %244 : vector<4x256xf32>
    %c0_89 = arith.constant 0 : index
    %c0_90 = arith.constant 0 : index
    %c0_91 = arith.constant 0 : index
    %246 = vector.load %arg12[%c0_89, %c0_90, %c0_91] : memref<1x4x256xf32, #tpu.memory_space<vmem>>, vector<1x4x256xf32>
    %247 = vector.shape_cast %246 : vector<1x4x256xf32> to vector<4x256xf32>
    %248 = vector.shape_cast %245 : vector<4x256xf32> to vector<1x4x256xf32>
    tpu.vector_store %arg12[%c0_89, %c0_90, %c0_91], %248 {strides = array<i32>} : memref<1x4x256xf32, #tpu.memory_space<vmem>>, vector<1x4x256xf32>,
    return
  }
  func.func @transform_0(%arg0: i32) -> (i32, i32, i32) {
    %c0_i32 = arith.constant 0 : i32
    %c0_i32_0 = arith.constant 0 : i32
    %c0_i32_1 = arith.constant 0 : i32
    return %arg0, %c0_i32, %c0_i32_0 : i32, i32, i32
  }
  func.func @transform_1(%arg0: i32) -> (i32, i32, i32) {
    %c0_i32 = arith.constant 0 : i32
    %c0_i32_0 = arith.constant 0 : i32
    %c0_i32_1 = arith.constant 0 : i32
    return %arg0, %c0_i32, %c0_i32_0 : i32, i32, i32
  }
  func.func @transform_2(%arg0: i32) -> (i32, i32, i32) {
    %c0_i32 = arith.constant 0 : i32
    %c0_i32_0 = arith.constant 0 : i32
    %c0_i32_1 = arith.constant 0 : i32
    return %arg0, %c0_i32, %c0_i32_0 : i32, i32, i32
  }
  func.func @transform_3(%arg0: i32) -> (i32, i32) {
    %c0_i32 = arith.constant 0 : i32
    %c0_i32_0 = arith.constant 0 : i32
    %c0_i32_1 = arith.constant 0 : i32
    return %c0_i32, %c0_i32_0 : i32, i32
  }
  func.func @transform_4(%arg0: i32) -> (i32, i32) {
    %c0_i32 = arith.constant 0 : i32
    %c0_i32_0 = arith.constant 0 : i32
    %c0_i32_1 = arith.constant 0 : i32
    return %c0_i32, %c0_i32_0 : i32, i32
  }
  func.func @transform_5(%arg0: i32) -> (i32, i32) {
    %c0_i32 = arith.constant 0 : i32
    %c0_i32_0 = arith.constant 0 : i32
    %c0_i32_1 = arith.constant 0 : i32
    return %c0_i32, %c0_i32_0 : i32, i32
  }
  func.func @transform_6(%arg0: i32) -> (i32, i32) {
    %c0_i32 = arith.constant 0 : i32
    %c0_i32_0 = arith.constant 0 : i32
    %c0_i32_1 = arith.constant 0 : i32
    return %c0_i32, %c0_i32_0 : i32, i32
  }
  func.func @transform_7(%arg0: i32) -> (i32, i32) {
    %c0_i32 = arith.constant 0 : i32
    %c0_i32_0 = arith.constant 0 : i32
    %c0_i32_1 = arith.constant 0 : i32
    return %c0_i32, %c0_i32_0 : i32, i32
  }
  func.func @transform_8(%arg0: i32) -> (i32, i32) {
    %c0_i32 = arith.constant 0 : i32
    %c0_i32_0 = arith.constant 0 : i32
    %c0_i32_1 = arith.constant 0 : i32
    return %c0_i32, %c0_i32_0 : i32, i32
  }
  func.func @transform_9(%arg0: i32) -> (i32, i32) {
    %c0_i32 = arith.constant 0 : i32
    %c0_i32_0 = arith.constant 0 : i32
    %c0_i32_1 = arith.constant 0 : i32
    return %c0_i32, %c0_i32_0 : i32, i32
  }
  func.func @transform_10(%arg0: i32) -> (i32, i32) {
    %c0_i32 = arith.constant 0 : i32
    %c0_i32_0 = arith.constant 0 : i32
    %c0_i32_1 = arith.constant 0 : i32
    return %c0_i32, %c0_i32_0 : i32, i32
  }
  func.func @transform_11(%arg0: i32) -> (i32, i32, i32) {
    %c0_i32 = arith.constant 0 : i32
    %c0_i32_0 = arith.constant 0 : i32
    %c0_i32_1 = arith.constant 0 : i32
    return %arg0, %c0_i32, %c0_i32_0 : i32, i32, i32
  }
}

</mosaic_0001>

<bundles_post_ra>
// kernel: daf_forward.1
= control target key start
LH: loop header
LB: loop body
LE: loop exit
PB: predicated region body
PF: predicated region fallthrough
CT: control target
= control target key end

     0   :  { %s1507_s17 = smov 0   ;;  %s1961_s0 = inlined_call_operand.vmem [shape: f32[2,4,256], index: 0, kind: input, shape index: {}]   ;;  %s1962_s1 = inlined_call_operand.vmem [shape: f32[2,4,256], index: 1, kind: input, shape index: {}]   ;;  %s1963_s2 = inlined_call_operand.vmem [shape: f32[2,8,256], index: 2, kind: input, shape index: {}]   ;;  %s1964_s3 = inlined_call_operand.vmem [shape: f32[4,72], index: 3, kind: input, shape index: {}]   ;;  %s1965_s4 = inlined_call_operand.vmem [shape: f32[4,1], index: 4, kind: input, shape index: {}]   ;;  %s1966_s5 = inlined_call_operand.vmem [shape: f32[4,36], index: 5, kind: input, shape index: {}]   ;;  %s1967_s6 = inlined_call_operand.vmem [shape: f32[4,1], index: 6, kind: input, shape index: {}]   ;;  %s1968_s7 = inlined_call_operand.vmem [shape: f32[4,4], index: 7, kind: input, shape index: {}]   ;;  %s1969_s8 = inlined_call_operand.vmem [shape: f32[4,1], index: 8, kind: input, shape index: {}]   ;;  %s1970_s9 = inlined_call_operand.vmem [shape: f32[4,9], index: 9, kind: input, shape index: {}]   ;;  %s1971_s10 = inlined_call_operand.vmem [shape: f32[4,1], index: 10, kind: input, shape index: {}]   ;;  %s1972_s11 = inlined_call_operand.vmem [shape: f32[2,4,256], index: 11, kind: output, shape index: {}]  }
   0x1 LB: > { %s1356_s18 = sadd.s32 4294967295, %s1435_s17   ;;  %p1360_p0 = scmp.ge.s32.totalorder %s1435_s17, 1  ;;  %s1435_s17 = sphi %s1507_s17, %s21_s17  }
   0x2   : > { %p357_p1 = scmp.lt.s32.totalorder %s1435_s17, 3 }
   0x4   : > { %p358_p2 = pnand %p1360_p0, %p357_p1 }
   0x5   : > { %p407_p3 = scmp.lt.s32.totalorder (!%p358_p2), %s1356_s18, 1  ;;  %s1438_s23 = smov (!%p358_p2), 112  }
   0x6   : > { %361 = sbr.rel (%p358_p2) target bundleno = 1033 (0x409), region = 64  ;;  %s1439_s24 = smov (!%p358_p2), 111  }
   0x7   : > { %s1440_s25 = smov (!%p358_p2), 113   ;;  %s1441_s26 = smov (!%p358_p2), 127  }
   0x8   : > { %s1442_s27 = smov (!%p358_p2), 1   ;;  %s1443_s28 = smov (!%p358_p2), 15  }
   0x9   : > { %s1445_s29 = smov (!%p358_p2), 16   ;;  %s1446_s30 = smov (!%p358_p2), 17  }
   0xb   : > { %v1437_v0 = vmov 0.0   ;;  %s1982_s18 = smov (!%p407_p3, %s1356_s18), 1  ;;  %v1444_v3 = vmov 0   ;;  %v571_v4 = vld [vmem:[%s1965_s4] sm:$0xf]  ;;  %v431_v5 = vlaneseq }
   0xc   : > { %717 = vmatprep.mubr.f32.mxu0 %v1437_v0  ;;  %911 = vmatprep.mubr.f32.mxu1 %v1437_v0  ;;  %s1399_s19 = sshll.u32 %s1982_s18, 4  ;;  %v570_v18 = vld [vmem:[%s1964_s3] sm:$0xf]  ;;  %s1702_s16 = sshll.u32 %s1982_s18, 3 }
   0xd   : > { %s421_s22 = scalar_lea.vmem %s1963_s2, %s1399_s19  ;;  %1419 = vset.pattern.permute.xlu0 %v1444_v3  ;;  %1420 = vset.pattern.permute.xlu1 %v1444_v3  ;;  %v1562_v6 = vand.u32 127, %v431_v5  ;;  %s411_s21 = scalar_lea.vmem %s1961_s0, %s1702_s16 }
   0xe   : > { %v1523_v1 = vld [vmem:[%s421_s22] sm:$0xff]  ;;  %v1529_v2 = vld [vmem:[%s421_s22 + $0x8] sm:$0xff]  ;;  %s416_s13 = scalar_lea.vmem %s1962_s1, %s1702_s16  ;;  %s426_s22 = scalar_lea.vmem %s1972_s11, %s1702_s16 }
   0xf   : > { %626 = vrot.lane.b32.xlu1 %v1523_v1, %s1438_s23  ;;  %635 = vrot.lane.b32.xlu0 %v1523_v1, %s1439_s24  ;;  %v433_v7 = vadd.s32 128, %v1562_v6  ;;  %v438_v10 = vand.u32 15, %v1562_v6  ;;  %vm630_vm7 = vcmp.lt.s32.totalorder %v1562_v6, 112  ;;  %vm639_vm8 = vcmp.lt.s32.totalorder %v1562_v6, 111  ;;  %v427_v24 = vld [vmem:[%s411_s21] sm:$0xff] }
  0x10   : > { %v502_v28 = vadd.s32 4294967295, %v1562_v6  ;;  %vm621_vm12 = vcmp.lt.s32.totalorder %v1562_v6, 113  ;;  %v486_v38 = vadd.s32 4294967281, %v1562_v6  ;;  %vm612_vm15 = vcmp.lt.s32.totalorder %v1562_v6, 127 }
  0x11   : > { %v445_v8 = vand.u32 15, %v433_v7  ;;  %v557_v9 = vadd.s32 17, %v433_v7  ;;  %v545_v11 = vadd.s32 16, %v433_v7  ;;  %v531_v13 = vadd.s32 15, %v433_v7 }
  0x12   : > { %vm1572_vm3 = vcmp.ne.s32.totalorder %v438_v10, 15  ;;  %v517_v17 = vadd.s32 1, %v433_v7  ;;  %vm1593_vm9 = vcmp.ne.s32.totalorder %v438_v10, 0  ;;  %vm504_vm14 = vcmp.ge.s32.totalorder %v502_v28, 0 }
  0x13   : > { %628 = vrot.lane.b32.xlu1 %v1529_v2, %s1438_s23  ;;  %637 = vrot.lane.b32.xlu0 %v1529_v2, %s1439_s24  ;;  %vm1566_vm0 = vcmp.ne.s32.totalorder %v445_v8, 15  ;;  %vm561_vm1 = vcmp.lt.s32.totalorder %v557_v9, 256  ;;  %vm549_vm4 = vcmp.lt.s32.totalorder %v545_v11, 256  ;;  %vm1576_vm5 = vcmp.ne.s32.totalorder %v445_v8, 0 }
  0x14   : > { %vm565_vm2 = vmand %vm561_vm1, %vm1566_vm0  ;;  %vm535_vm6 = vcmp.lt.s32.totalorder %v531_v13, 256  ;;  %v1588_v20 = vsel %vm1572_vm3, 1.0, %v1437_v0  ;;  %v1591_v21 = vsel %vm549_vm4, 1.0, %v1437_v0  ;;  %vm521_vm11 = vcmp.lt.s32.totalorder %v517_v17, 256 }
  0x15   : > { %v1583_v19 = vsel %vm565_vm2, 1.0, %v1437_v0  ;;  %vm539_vm10 = vmand %vm535_vm6, %vm1576_vm5  ;;  %v1612_v31 = vsel %vm1593_vm9, 1.0, %v1437_v0  ;;  %vm488_vm2 = vcmp.ge.s32.totalorder %v486_v38, 0  ;;  %vm603_vm4 = vcmp.lt.s32.totalorder %v1562_v6, 1 }
  0x16   : > { %v1615_v32 = vsel %vm539_vm10, 1.0, %v1437_v0  ;;  %vm525_vm13 = vmand %vm521_vm11, %vm1566_vm0  ;;  %v1645_v49 = vsel %vm1576_vm5, 1.0, %v1437_v0  ;;  %v474_v53 = vadd.s32 4294967280, %v1562_v6  ;;  %v458_v56 = vadd.s32 4294967279, %v1562_v6 }
  0x17   : > { %619 = vrot.lane.b32.xlu1 %v1529_v2, %s1440_s25  ;;  %617 = vrot.lane.b32.xlu0 %v1523_v1, %s1440_s25  ;;  %v1631_v42 = vsel %vm525_vm13, 1.0, %v1437_v0  ;;  %vm510_vm1 = vmand %vm504_vm14, %vm1593_vm9  ;;  %vm594_vm5 = vcmp.lt.s32.totalorder %v1562_v6, 15  ;;  %v1669_v60 = vsel %vm1566_vm0, 1.0, %v1437_v0  ;;  %vm585_vm11 = vcmp.lt.s32.totalorder %v1562_v6, 16 }
  0x18   : > { %v1648_v50 = vsel %vm510_vm1, 1.0, %v1437_v0  ;;  %vm496_vm6 = vmand %vm488_vm2, %vm1572_vm3  ;;  %vm476_vm3 = vcmp.ge.s32.totalorder %v474_v53, 0  ;;  %vm460_vm10 = vcmp.ge.s32.totalorder %v458_v56, 0  ;;  %vm576_vm13 = vcmp.lt.s32.totalorder %v1562_v6, 17  ;;  %v1036_v6 = vld [vmem:[%s1970_s9] sm:$0xf] }
  0x19   : > { %v1664_v59 = vsel %vm496_vm6, 1.0, %v1437_v0  ;;  %vm468_vm0 = vmand %vm460_vm10, %vm1593_vm9  ;;  %vm649_vm9 = vcmask 588800   ;;  %vm823_vm14 = vcmask 1043456   ;;  %vm837_vm1 = vcmask 293888  }
  0x1a   : > { %v1690_v11 = vsel %vm468_vm0, 1.0, %v1437_v0  ;;  %vm923_vm2 = vcmask 31744   ;;  %vm1141_vm6 = vcmask 1041408  }
  0x1b   : > { %610 = vrot.lane.b32.xlu1 %v1529_v2, %s1441_s26  ;;  %608 = vrot.lane.b32.xlu0 %v1523_v1, %s1441_s26 }
  0x1f   : > { %601 = vrot.lane.b32.xlu1 %v1529_v2, %s1442_s27  ;;  %599 = vrot.lane.b32.xlu0 %v1523_v1, %s1442_s27 }
  0x23   : > { %592 = vrot.lane.b32.xlu1 %v1529_v2, %s1443_s28  ;;  %590 = vrot.lane.b32.xlu0 %v1523_v1, %s1443_s28 }
  0x27   : > { %583 = vrot.lane.b32.xlu1 %v1529_v2, %s1445_s29  ;;  %581 = vrot.lane.b32.xlu0 %v1523_v1, %s1445_s29 }
  0x2b   : > { %574 = vrot.lane.b32.xlu1 %v1529_v2, %s1446_s30  ;;  %572 = vrot.lane.b32.xlu0 %v1523_v1, %s1446_s30 }
  0x2f   : > { %646 = vperm.xlu0 %1419, %v571_v4   ;;  %v1679_v4 = vsel %vm476_vm3, 1.0, %v1437_v0 }
  0x81   : > { %v627_v14 = vpop.permute.xlu1 %626  ;;  %v636_v15 = vpop.permute.xlu0 %635 }
  0x85   : > { %v629_v22 = vpop.permute.xlu1 %628  ;;  %v638_v23 = vpop.permute.xlu0 %637 }
  0x86   : > { %v632_v25 = vsel %vm630_vm7, %v629_v22, %v627_v14  ;;  %v640_v26 = vsel %vm639_vm8, %v636_v15, %v638_v23  ;;  %v641_v27 = vsel %vm639_vm8, %v638_v23, %v636_v15  ;;  %v631_v41 = vsel %vm630_vm7, %v627_v14, %v629_v22 }
  0x87   : > { %v643_v29 = vmul.f32 %v1583_v19, %v641_v27  ;;  %v642_v30 = vmul.f32 %v1588_v20, %v640_v26  ;;  %v634_v33 = vmul.f32 %v1591_v21, %v632_v25  ;;  %v1712_v25 = vld [vmem:[%s416_s13] sm:$0xff] }
  0x89   : > { %v620_v34 = vpop.permute.xlu1 %619  ;;  %667 = vmatprep.subr.mxu0 %v643_v29  ;;  %v618_v35 = vpop.permute.xlu0 %617  ;;  %v724_v29 = vadd.f32 %v1712_v25, %v427_v24 }
  0x8a   : > { %v622_v36 = vsel %vm621_vm12, %v618_v35, %v620_v34  ;;  %v623_v37 = vsel %vm621_vm12, %v620_v34, %v618_v35  ;;  %668 = vmatpush1.msra.mxu0 %v642_v30 }
  0x8b   : > { %v624_v39 = vmul.f32 %v1612_v31, %v622_v36  ;;  %v625_v40 = vmul.f32 %v1615_v32, %v623_v37  ;;  %669 = vmatprep.subr.mxu0 %v634_v33 }
  0x8c   : > { %670 = vmatpush1.msra.mxu0 %v631_v41 }
  0x8d   : > { %v611_v43 = vpop.permute.xlu1 %610  ;;  %671 = vmatprep.subr.mxu0 %v625_v40  ;;  %v609_v44 = vpop.permute.xlu0 %608 }
  0x8e   : > { %v613_v45 = vsel %vm612_vm15, %v609_v44, %v611_v43  ;;  %v614_v46 = vsel %vm612_vm15, %v611_v43, %v609_v44  ;;  %672 = vmatpush1.msra.mxu0 %v624_v39 }
  0x8f   : > { %v615_v47 = vmul.f32 %v1588_v20, %v613_v45  ;;  %v616_v48 = vmul.f32 %v1631_v42, %v614_v46 }
  0x91   : > { %v602_v51 = vpop.permute.xlu1 %601  ;;  %673 = vmatprep.subr.mxu0 %v616_v48  ;;  %v600_v52 = vpop.permute.xlu0 %599 }
  0x92   : > { %v604_v54 = vsel %vm603_vm4, %v600_v52, %v602_v51  ;;  %v605_v55 = vsel %vm603_vm4, %v602_v51, %v600_v52  ;;  %674 = vmatpush1.msra.mxu0 %v615_v47 }
  0x93   : > { %v606_v57 = vmul.f32 %v1648_v50, %v605_v55  ;;  %v607_v58 = vmul.f32 %v1645_v49, %v604_v54  ;;  %675 = vmatprep.subr.mxu0 %v1529_v2  ;;  %v731_v54 = vld [vmem:[%s1967_s6] sm:$0xf] }
  0x94   : > { %676 = vmatpush1.msra.mxu0 %v1523_v1  ;;  %v1037_v55 = vld [vmem:[%s1971_s10] sm:$0xf] }
  0x95   : > { %v593_v61 = vpop.permute.xlu1 %592  ;;  %677 = vmatprep.subr.mxu0 %v607_v58  ;;  %v591_v62 = vpop.permute.xlu0 %590 }
  0x96   : > { %v595_v63 = vsel %vm594_vm5, %v591_v62, %v593_v61  ;;  %v596_v2 = vsel %vm594_vm5, %v593_v61, %v591_v62  ;;  %678 = vmatpush1.msra.mxu0 %v606_v57 }
  0x97   : > { %v597_v1 = vmul.f32 %v1664_v59, %v596_v2  ;;  %v598_v3 = vmul.f32 %v1669_v60, %v595_v63 }
  0x99   : > { %v584_v5 = vpop.permute.xlu1 %583  ;;  %679 = vmatprep.subr.mxu0 %v598_v3  ;;  %v582_v7 = vpop.permute.xlu0 %581 }
  0x9a   : > { %v587_v8 = vsel %vm585_vm11, %v584_v5, %v582_v7  ;;  %680 = vmatpush1.msra.mxu0 %v597_v1  ;;  %v586_v9 = vsel %vm585_vm11, %v582_v7, %v584_v5 }
  0x9b   : > { %v588_v10 = vmul.f32 %v1679_v4, %v587_v8  ;;  %681 = vmatprep.subr.mxu0 %v586_v9 }
  0x9d   : > { %v575_v12 = vpop.permute.xlu1 %574  ;;  %682 = vmatpush1.msra.mxu0 %v588_v10  ;;  %v573_v13 = vpop.permute.xlu0 %572 }
  0x9e   : > { %v577_v14 = vsel %vm576_vm13, %v573_v13, %v575_v12  ;;  %v578_v15 = vsel %vm576_vm13, %v575_v12, %v573_v13 }
  0x9f   : > { %v579_v16 = vmul.f32 %v1690_v11, %v578_v15  ;;  %v580_v17 = vmul.f32 %v1645_v49, %v577_v14 }
  0xa1   : > { %683 = vmatprep.subr.mxu0 %v580_v17 }
  0xa2   : > { %684 = vmatpush1.msra.mxu0 %v579_v16 }
  0xa3   : > { %1383 = vmatmul.mubr.msk.f32.vlgmr.msra.gmra.mxu0 %vm649_vm9, %v570_v18 }
  0xaa   : > { %v647_v23 = vpop.permute.xlu0 %646 }
 0x163   : > { %v719_v22 = vpop.f32.mrf.mxu0 }
 0x164   : > { %v1714_v27 = vadd.f32 %v719_v22, %v647_v23 }
 0x165   : > { %v721_v26 = vpop.f32.mrf.mxu0 }
 0x166   : > { %v1716_v28 = vadd.f32 %v721_v26, %v647_v23 }
 0x168   : > { %v1721_v30 = vcombine.low %v1714_v27, %v1716_v28 }
 0x16a   : > { %v1724_v33 = vadd.f32 %v1721_v30, %v724_v29 }
 0x16c   : > { %791 = vrot.lane.b32.xlu0 %v1724_v33, %s1439_s24  ;;  %783 = vrot.lane.b32.xlu1 %v1724_v33, %s1438_s23  ;;  %v1019_v34 = vsel %vm823_vm14, %v1724_v33, 0.0  ;;  %v1734_v35 = vcombine.high %v1724_v33, %v1724_v33 }
 0x16d   : > { %v1020_v36 = vrot.slane %v1019_v34, 4 }
 0x16e   : > { %v1026_v38 = vsel %vm823_vm14, %v1734_v35, 0.0 }
 0x16f   : > { %v1021_v37 = vadd.f32 %v1020_v36, %v1019_v34  ;;  %v1027_v40 = vrot.slane %v1026_v38, 4 }
 0x170   : > { %767 = vrot.lane.b32.xlu0 %v1724_v33, %s1441_s26  ;;  %785 = vrot.lane.b32.xlu1 %v1734_v35, %s1438_s23 }
 0x171   : > { %v1022_v39 = vrot.slane %v1021_v37, 2  ;;  %v1028_v43 = vadd.f32 %v1027_v40, %v1026_v38 }
 0x173   : > { %v1023_v41 = vadd.f32 %v1022_v39, %v1021_v37  ;;  %v1029_v45 = vrot.slane %v1028_v43, 2 }
 0x174   : > { %775 = vrot.lane.b32.xlu0 %v1724_v33, %s1440_s25  ;;  %793 = vrot.lane.b32.xlu1 %v1734_v35, %s1439_s24 }
 0x175   : > { %v1024_v44 = vrot.slane %v1023_v41, 1  ;;  %v1030_v47 = vadd.f32 %v1029_v45, %v1028_v43 }
 0x177   : > { %v1025_v46 = vadd.f32 %v1024_v44, %v1023_v41  ;;  %v1031_v51 = vrot.slane %v1030_v47, 1 }
 0x178   : > { %759 = vrot.lane.b32.xlu0 %v1724_v33, %s1442_s27  ;;  %769 = vrot.lane.b32.xlu1 %v1734_v35, %s1441_s26 }
 0x179   : > { %v1762_v48 = vmul.f32 0.25, %v1025_v46  ;;  %v1032_v52 = vadd.f32 %v1031_v51, %v1030_v47 }
 0x17b   : > { %v1772_v53 = vmul.f32 0.25, %v1032_v52 }
 0x17c   : > { %751 = vrot.lane.b32.xlu0 %v1724_v33, %s1443_s28  ;;  %777 = vrot.lane.b32.xlu1 %v1734_v35, %s1440_s25 }
 0x180   : > { %743 = vrot.lane.b32.xlu0 %v1724_v33, %s1445_s29  ;;  %761 = vrot.lane.b32.xlu1 %v1734_v35, %s1442_s27 }
 0x184   : > { %735 = vrot.lane.b32.xlu0 %v1724_v33, %s1446_s30  ;;  %753 = vrot.lane.b32.xlu1 %v1734_v35, %s1443_s28 }
 0x188   : > { %1046 = vrot.lane.b32.xlu0 %v1762_v48, %s1445_s29  ;;  %745 = vrot.lane.b32.xlu1 %v1734_v35, %s1445_s29 }
 0x18c   : > { %1054 = vrot.lane.b32.xlu0 %v1762_v48, %s1443_s28  ;;  %737 = vrot.lane.b32.xlu1 %v1734_v35, %s1446_s30 }
 0x190   : > { %1038 = vrot.lane.b32.xlu0 %v1762_v48, %s1446_s30  ;;  %1048 = vrot.lane.b32.xlu1 %v1772_v53, %s1445_s29 }
 0x194   : > { %1062 = vrot.lane.b32.xlu0 %v1762_v48, %s1442_s27  ;;  %1056 = vrot.lane.b32.xlu1 %v1772_v53, %s1443_s28 }
 0x198   : > { %1070 = vrot.lane.b32.xlu0 %v1762_v48, %s1441_s26  ;;  %1040 = vrot.lane.b32.xlu1 %v1772_v53, %s1446_s30 }
 0x19c   : > { %1078 = vrot.lane.b32.xlu0 %v1762_v48, %s1440_s25  ;;  %1064 = vrot.lane.b32.xlu1 %v1772_v53, %s1442_s27 }
 0x1a0   : > { %1086 = vrot.lane.b32.xlu0 %v1762_v48, %s1438_s23  ;;  %1072 = vrot.lane.b32.xlu1 %v1772_v53, %s1441_s26 }
 0x1a4   : > { %1094 = vrot.lane.b32.xlu0 %v1762_v48, %s1439_s24  ;;  %1080 = vrot.lane.b32.xlu1 %v1772_v53, %s1440_s25 }
 0x1a8   : > { %1088 = vrot.lane.b32.xlu1 %v1772_v53, %s1438_s23 }
 0x1ac   : > { %1096 = vrot.lane.b32.xlu1 %v1772_v53, %s1439_s24 }
 0x1b0   : > { %834 = vperm.xlu1 %1420, %v731_v54  }
 0x1b4   : > { %1160 = vperm.xlu1 %1420, %v1037_v55  }
 0x1de   : > { %v792_v56 = vpop.permute.xlu0 %791  ;;  %v784_v57 = vpop.permute.xlu1 %783 }
 0x1e2   : > { %v768_v58 = vpop.permute.xlu0 %767  ;;  %v786_v61 = vpop.permute.xlu1 %785 }
 0x1e3   : > { %v788_v7 = vsel %vm630_vm7, %v786_v61, %v784_v57  ;;  %v787_v13 = vsel %vm630_vm7, %v784_v57, %v786_v61 }
 0x1e4   : > { %v790_v14 = vmul.f32 %v1591_v21, %v788_v7  ;;  %v819_v22 = vrot.slane %v787_v13, 4 }
 0x1e6   : > { %v776_v62 = vpop.permute.xlu0 %775  ;;  %v794_v63 = vpop.permute.xlu1 %793  ;;  %v820_v26 = vrot.slane %v790_v14, 4 }
 0x1e7   : > { %v795_v2 = vsel %vm639_vm8, %v792_v56, %v794_v63  ;;  %v796_v1 = vsel %vm639_vm8, %v794_v63, %v792_v56 }
 0x1e8   : > { %v797_v3 = vmul.f32 %v1588_v20, %v795_v2  ;;  %v798_v5 = vmul.f32 %v1583_v19, %v796_v1 }
 0x1ea   : > { %v760_v8 = vpop.permute.xlu0 %759  ;;  %1384 = vmatprep.subr.msk.mxu1 %vm823_vm14, %v798_v5  ;;  %v770_v9 = vpop.permute.xlu1 %769 }
 0x1eb   : > { %v771_v10 = vsel %vm612_vm15, %v768_v58, %v770_v9  ;;  %v772_v12 = vsel %vm612_vm15, %v770_v9, %v768_v58  ;;  %1385 = vmatpush1.msk.msra.mxu1 %vm823_vm14, %v797_v3 }
 0x1ec   : > { %v774_v15 = vmul.f32 %v1631_v42, %v772_v12  ;;  %v773_v16 = vmul.f32 %v1588_v20, %v771_v10 }
 0x1ee   : > { %v752_v17 = vpop.permute.xlu0 %751  ;;  %v778_v18 = vpop.permute.xlu1 %777  ;;  %v814_v29 = vrot.slane %v774_v15, 4  ;;  %v813_v37 = vrot.slane %v773_v16, 4 }
 0x1ef   : > { %v779_v23 = vsel %vm621_vm12, %v776_v62, %v778_v18  ;;  %v780_v24 = vsel %vm621_vm12, %v778_v18, %v776_v62 }
 0x1f0   : > { %v781_v34 = vmul.f32 %v1612_v31, %v779_v23  ;;  %v782_v36 = vmul.f32 %v1615_v32, %v780_v24  ;;  %v829_v47 = vsel %vm823_vm14, %v1734_v35, %v814_v29  ;;  %v828_v51 = vsel %vm823_vm14, %v1724_v33, %v813_v37 }
 0x1f2   : > { %v744_v38 = vpop.permute.xlu0 %743  ;;  %v762_v39 = vpop.permute.xlu1 %761  ;;  %v831_v40 = vsel %vm823_vm14, %v782_v36, %v820_v26  ;;  %v830_v41 = vsel %vm823_vm14, %v781_v34, %v819_v22  ;;  %v730_v26 = vld [vmem:[%s1966_s5] sm:$0xf] }
 0x1f3   : > { %v763_v43 = vsel %vm603_vm4, %v760_v8, %v762_v39  ;;  %v764_v44 = vsel %vm603_vm4, %v762_v39, %v760_v8  ;;  %871 = vmatprep.subr.mxu1 %v831_v40  ;;  %v922_v36 = vld [vmem:[%s1968_s7] sm:$0xf] }
 0x1f4   : > { %v765_v45 = vmul.f32 %v1648_v50, %v764_v44  ;;  %v766_v46 = vmul.f32 %v1645_v49, %v763_v43  ;;  %872 = vmatpush1.msra.mxu1 %v830_v41 }
 0x1f5   : > { %873 = vmatprep.subr.mxu1 %v829_v47 }
 0x1f6   : > { %v736_v52 = vpop.permute.xlu0 %735  ;;  %874 = vmatpush1.msra.mxu1 %v828_v51  ;;  %v754_v54 = vpop.permute.xlu1 %753  ;;  %v807_v57 = vrot.slane %v765_v45, 4  ;;  %v808_v58 = vrot.slane %v766_v46, 4 }
 0x1f7   : > { %v755_v55 = vsel %vm594_vm5, %v752_v17, %v754_v54  ;;  %v756_v56 = vsel %vm594_vm5, %v754_v54, %v752_v17 }
 0x1f8   : > { %v757_v61 = vmul.f32 %v1664_v59, %v756_v56  ;;  %v758_v62 = vmul.f32 %v1669_v60, %v755_v55 }
 0x1fa   : > { %v1047_v63 = vpop.permute.xlu0 %1046  ;;  %v746_v2 = vpop.permute.xlu1 %745  ;;  %v827_v1 = vsel %vm823_vm14, %v758_v62, %v808_v58  ;;  %v826_v3 = vsel %vm823_vm14, %v757_v61, %v807_v57 }
 0x1fb   : > { %v748_v5 = vsel %vm585_vm11, %v746_v2, %v744_v38  ;;  %875 = vmatprep.subr.mxu1 %v827_v1  ;;  %v747_v8 = vsel %vm585_vm11, %v744_v38, %v746_v2 }
 0x1fc   : > { %v749_v7 = vmul.f32 %v1679_v4, %v748_v5  ;;  %876 = vmatpush1.msra.mxu1 %v826_v3  ;;  %v802_v15 = vrot.slane %v747_v8, 4 }
 0x1fe   : > { %v1055_v9 = vpop.permute.xlu0 %1054  ;;  %v738_v10 = vpop.permute.xlu1 %737  ;;  %v801_v14 = vrot.slane %v749_v7, 4 }
 0x1ff   : > { %v739_v12 = vsel %vm576_vm13, %v736_v52, %v738_v10  ;;  %v740_v13 = vsel %vm576_vm13, %v738_v10, %v736_v52 }
 0x200   : > { %v741_v16 = vmul.f32 %v1690_v11, %v740_v13  ;;  %v742_v17 = vmul.f32 %v1645_v49, %v739_v12 }
 0x202   : > { %v1039_v18 = vpop.permute.xlu0 %1038  ;;  %v1049_v22 = vpop.permute.xlu1 %1048  ;;  %v825_v23 = vsel %vm823_vm14, %v742_v17, %v802_v15  ;;  %v824_v24 = vsel %vm823_vm14, %v741_v16, %v801_v14 }
 0x203   : > { %877 = vmatprep.subr.mxu1 %v825_v23  ;;  %v1051_v40 = vsel %vm585_vm11, %v1049_v22, %v1047_v63  ;;  %v1050_v46 = vsel %vm585_vm11, %v1047_v63, %v1049_v22 }
 0x204   : > { %878 = vmatpush1.msra.mxu1 %v824_v24  ;;  %v1052_v47 = vmul.f32 %v1679_v4, %v1051_v40  ;;  %v1105_v62 = vrot.slane %v1050_v46, 7 }
 0x205   : > { %1386 = vmatmul.mubr.msk.f32.vlgmr.msra.gmra.mxu1 %vm837_vm1, %v730_v26  ;;  %1387 = vmatprep.subr.msk.mxu1 %vm823_vm14, %v1734_v35 }
 0x206   : > { %v1063_v29 = vpop.permute.xlu0 %1062  ;;  %1388 = vmatpush1.msk.msra.mxu1 %vm823_vm14, %v1724_v33  ;;  %v1057_v34 = vpop.permute.xlu1 %1056  ;;  %995 = vmatprep.mubr.f32.mxu1 %v1437_v0  ;;  %v1104_v2 = vrot.slane %v1052_v47, 7 }
 0x207   : > { %v1058_v44 = vsel %vm594_vm5, %v1055_v9, %v1057_v34  ;;  %v1059_v51 = vsel %vm594_vm5, %v1057_v34, %v1055_v9  ;;  %vm1144_vm5 = vcmask 1042432  }
 0x208   : > { %v1061_v57 = vmul.f32 %v1669_v60, %v1058_v44  ;;  %v1060_v63 = vmul.f32 %v1664_v59, %v1059_v51 }
 0x209   : > { %1389 = vmatmul.mubr.msk.f32.vlgmr.msra.gmra.mxu1 %vm923_vm2, %v922_v36 }
 0x20a   : > { %v1041_v37 = vpop.permute.xlu1 %1040  ;;  %1237 = vmatprep.mubr.f32.mxu1 %v1437_v0  ;;  %v1071_v38 = vpop.permute.xlu0 %1070  ;;  %v1111_v59 = vrot.slane %v1061_v57, 6  ;;  %v1110_v10 = vrot.slane %v1060_v63, 6 }
 0x20b   : > { %v1042_v41 = vsel %vm576_vm13, %v1039_v18, %v1041_v37  ;;  %v1043_v45 = vsel %vm576_vm13, %v1041_v37, %v1039_v18 }
 0x20c   : > { %v1045_v55 = vmul.f32 %v1645_v49, %v1042_v41  ;;  %v1044_v58 = vmul.f32 %v1690_v11, %v1043_v45 }
 0x20e   : > { %v1065_v39 = vpop.permute.xlu1 %1064  ;;  %v1079_v52 = vpop.permute.xlu0 %1078 }
 0x20f   : > { %v1066_v43 = vsel %vm603_vm4, %v1063_v29, %v1065_v39  ;;  %v1067_v0 = vsel %vm603_vm4, %v1065_v39, %v1063_v29  ;;  %vm1138_vm4 = vcmask 1040384  }
 0x210   : > { %v1069_v56 = vmul.f32 %v1645_v49, %v1066_v43  ;;  %v1068_v61 = vmul.f32 %v1648_v50, %v1067_v0  ;;  %v1140_v11 = vsel %vm1138_vm4, %v1045_v55, %v1105_v62  ;;  %v1139_v9 = vsel %vm1138_vm4, %v1044_v58, %v1104_v2 }
 0x211   : > { %v1143_v16 = vsel %vm1141_vm6, %v1140_v11, %v1111_v59  ;;  %v1142_v18 = vsel %vm1141_vm6, %v1139_v9, %v1110_v10 }
 0x212   : > { %v1073_v54 = vpop.permute.xlu1 %1072  ;;  %v1117_v49 = vrot.slane %v1069_v56, 5  ;;  %v1116_v5 = vrot.slane %v1068_v61, 5  ;;  %v1087_v7 = vpop.permute.xlu0 %1086  ;;  %v1009_v61 = vld [vmem:[%s1969_s8] sm:$0xf] }
 0x213   : > { %v1074_v4 = vsel %vm612_vm15, %v1071_v38, %v1073_v54  ;;  %v1075_v1 = vsel %vm612_vm15, %v1073_v54, %v1071_v38  ;;  %vm1152_vm15 = vcmask 1045504  }
 0x214   : > { %v1076_v8 = vmul.f32 %v1588_v20, %v1074_v4  ;;  %v1077_v12 = vmul.f32 %v1631_v42, %v1075_v1  ;;  %v1146_v22 = vsel %vm1144_vm5, %v1143_v16, %v1117_v49  ;;  %v1145_v26 = vsel %vm1144_vm5, %v1142_v18, %v1116_v5 }
 0x215   : > { %v1148_v37 = vsel %vm823_vm14, %v1146_v22, %v1772_v53  ;;  %v1147_v40 = vsel %vm823_vm14, %v1145_v26, %v1762_v48 }
 0x216   : > { %v1081_v3 = vpop.permute.xlu1 %1080  ;;  %v1122_v23 = vrot.slane %v1076_v8, 3  ;;  %v1123_v42 = vrot.slane %v1077_v12, 3 }
 0x217   : > { %v1082_v60 = vsel %vm621_vm12, %v1079_v52, %v1081_v3  ;;  %v1083_v50 = vsel %vm621_vm12, %v1081_v3, %v1079_v52  ;;  %vm1149_vm12 = vcmask 1044480  }
 0x218   : > { %v1084_v13 = vmul.f32 %v1612_v31, %v1082_v60  ;;  %v1085_v14 = vmul.f32 %v1615_v32, %v1083_v50  ;;  %v1095_v32 = vpop.permute.xlu0 %1094  ;;  %v1150_v45 = vsel %vm1149_vm12, %v1147_v40, %v1122_v23  ;;  %v1151_v0 = vsel %vm1149_vm12, %v1148_v37, %v1123_v42 }
 0x21a   : > { %v1089_v15 = vpop.permute.xlu1 %1088  ;;  %v1128_v29 = vrot.slane %v1084_v13, 2  ;;  %v1129_v34 = vrot.slane %v1085_v14, 2 }
 0x21b   : > { %v1091_v17 = vsel %vm630_vm7, %v1089_v15, %v1087_v7  ;;  %v1090_v31 = vsel %vm630_vm7, %v1087_v7, %v1089_v15  ;;  %vm1155_vm7 = vcmask 1046528  }
 0x21c   : > { %v1093_v24 = vmul.f32 %v1591_v21, %v1091_v17  ;;  %v1134_v41 = vrot.slane %v1090_v31, 1  ;;  %v1153_v46 = vsel %vm1152_vm15, %v1150_v45, %v1128_v29  ;;  %v1154_v47 = vsel %vm1152_vm15, %v1151_v0, %v1129_v34 }
 0x21e   : > { %v1097_v36 = vpop.permute.xlu1 %1096  ;;  %v1135_v38 = vrot.slane %v1093_v24, 1  ;;  %v1156_v52 = vsel %vm1155_vm7, %v1153_v46, %v1134_v41 }
 0x21f   : > { %v1098_v39 = vsel %vm639_vm8, %v1095_v32, %v1097_v36  ;;  %v1099_v21 = vsel %vm639_vm8, %v1097_v36, %v1095_v32  ;;  %vm1163_vm8 = vcmask 72704  }
 0x220   : > { %v1100_v43 = vmul.f32 %v1588_v20, %v1098_v39  ;;  %v1101_v44 = vmul.f32 %v1583_v19, %v1099_v21  ;;  %v1157_v51 = vsel %vm1155_vm7, %v1154_v47, %v1135_v38 }
 0x222   : > { %1390 = vmatprep.subr.msk.mxu1 %vm1138_vm4, %v1101_v44 }
 0x223   : > { %1391 = vmatpush1.msk.msra.mxu1 %vm1138_vm4, %v1100_v43 }
 0x224   : > { %1203 = vmatprep.subr.mxu1 %v1157_v51 }
 0x225   : > { %1204 = vmatpush1.msra.mxu1 %v1156_v52 }
 0x226   : > { %1392 = vmatmul.mubr.msk.f32.vlgmr.msra.gmra.mxu1 %vm1163_vm8, %v1036_v6 }
 0x22b   : > { %v835_v1 = vpop.permute.xlu1 %834 }
 0x22f   : > { %v1161_v49 = vpop.permute.xlu1 %1160 }
 0x2c5   : > { %v913_v19 = vpop.f32.mrf.mxu1 }
 0x2c6   : > { %v914_v50 = vadd.f32 %v913_v19, %v835_v1 }
 0x2c7   : > { %v915_v20 = vpop.f32.mrf.mxu1 }
 0x2c8   : > { %v916_v11 = vadd.f32 %v915_v20, %v835_v1  ;;  %v918_v7 = vmax.f32 %v914_v50, 0.0 }
 0x2c9   : > { %v997_v54 = vpop.f32.mrf.mxu1 }
 0x2ca   : > { %v1002_v56 = vsel %vm823_vm14, %v997_v54, 0.0  ;;  %v919_v8 = vmax.f32 %v916_v11, 0.0  ;;  %v920_v13 = vmul.f32 %v918_v7, %v1724_v33 }
 0x2cb   : > { %v999_v55 = vpop.f32.mrf.mxu1 }
 0x2cc   : > { %v1003_v57 = vsel %vm823_vm14, %v999_v55, 0.0  ;;  %v921_v14 = vmul.f32 %v919_v8, %v1734_v35 }
 0x2cd   : > { %v1004_v58 = vadd.f32 %v1003_v57, %v1002_v56 }
 0x2cf   : > { %1005 = vadd.xlane.f32.xlu0 %v1004_v58 }
 0x2e6   : > { %v1239_v3 = vpop.f32.mrf.mxu1 }
 0x2e7   : > { %v1240_v59 = vadd.f32 %v1239_v3, %v1161_v49 }
 0x2e8   : > { %v1241_v60 = vpop.f32.mrf.mxu1 }
 0x2e9   : > { %v1242_v5 = vadd.f32 %v1241_v60, %v1161_v49  ;;  %v1244_v9 = vmax.f32 %v1240_v59, 0.0 }
 0x2eb   : > { %v1245_v10 = vmax.f32 %v1242_v5, 0.0  ;;  %v1246_v17 = vmul.f32 %v1244_v9, %v1762_v48 }
 0x2ed   : > { %v1247_v18 = vmul.f32 %v1245_v10, %v1772_v53 }
 0x358   : > { %v1006_v62 = vpop.xlane.xlu0 %1005 }
 0x359   : > { %v1008_v63 = vmul.f32 0.00390625, %v1006_v62 }
 0x35b   : > { %v1010_v4 = vadd.f32 %v1009_v61, %v1008_v63 }
 0x35d   : > { %v1011_v2 = vmax.f32 %v1010_v4, 0.0 }
 0x35f   : > { %1014 = vperm.xlu1 %1420, %v1011_v2  }
 0x3da   : > { %v1015_v12 = vpop.permute.xlu1 %1014 }
 0x3db   : > { %v1017_v15 = vmul.f32 %v1015_v12, %v1724_v33  ;;  %v1018_v16 = vmul.f32 %v1015_v12, %v1734_v35  ;;  %v1264_v33 = vsub.f32 %v1712_v25, %v1721_v30 }
 0x3dd   : > { %v1248_v22 = vadd.f32 %v1017_v15, %v920_v13  ;;  %v1249_v23 = vadd.f32 %v1018_v16, %v921_v14  ;;  %v1266_v48 = vcombine.high %v1264_v33, %v1264_v33 }
 0x3df   : > { %v1250_v24 = vadd.f32 %v1248_v22, %v1246_v17  ;;  %v1251_v26 = vadd.f32 %v1249_v23, %v1247_v18 }
 0x3e1   : > { %v1393_v42 = vmul.f32 -1.442695, %v1250_v24  ;;  %v1394_v29 = vmul.f32 -1.442695, %v1251_v26 }
 0x3e3   : > { %1421 = vpow2.f32 %v1393_v42 }
 0x3e4   : > { %1423 = vpow2.f32 %v1394_v29 }
 0x3f0   : > { %v1422_v31 = vpop.eup %1421 }
 0x3f1   : > { %v1424_v32 = vpop.eup %1423  ;;  %v1258_v34 = vadd.f32 1.0, %v1422_v31 }
 0x3f2   : > { %v1259_v36 = vadd.f32 1.0, %v1424_v32 }
 0x3f3   : > { %1425 = vrcp.f32 %v1258_v34 }
 0x3f4   : > { %1427 = vrcp.f32 %v1259_v36 }
 0x400   : > { %v1426_v35 = vpop.eup %1425 }
 0x401   : > { %v1428_v53 = vpop.eup %1427  ;;  %v1268_v37 = vmul.f32 %v1426_v35, %v1264_v33 }
 0x402   : > { %v1269_v38 = vmul.f32 %v1428_v53, %v1266_v48 }
 0x403   : > { %v1270_v39 = vadd.f32 %v1268_v37, %v1714_v27 }
 0x404   : > { %v1271_v21 = vadd.f32 %v1269_v38, %v1716_v28 }
 0x406   : > { %v1274_v40 = vcombine.low %v1270_v39, %v1271_v21 }
 0x408   : > { %1276 = vst [vmem:[%s426_s22] sm:$0xff] %v1274_v40 }
 0x409 PF: > { %s21_s17 = sadd.s32 1, %s1435_s17  }
 0x40a   : > { %p18_p4 = scmp.ge.s32.totalorder %s21_s17, 4  }
 0x40c   :  { %20 = sbr.rel (!%p18_p4) target bundleno = 1 (0x1), region = 100 }

</bundles_post_ra>
